<compile_context>
chip_gen: v7x
topology: tpu7x:2x2x1
jax: 0.10.0
libtpu: 0.0.40
codegen_flags: <defaults>
</compile_context>

<pallas_src>
import functools

import jax
import jax.numpy as jnp
from jax.experimental import pallas as pl
from jax.experimental.pallas import tpu as pltpu

LANES = 128
SUBLANES = 8


def _swish_kernel(x_ref, o_ref):
    # Exact SiLU in f32: HBM-bound kernel, so f32 compute is free and portable
    # across v5e (no bf16 VPU/EUP) and v6e/v7x.  exp/sigmoid runs on the EUP
    # slot, the multiply on the VPU -> neither is the bottleneck.
    xf = x_ref[...].astype(jnp.float32)
    y = xf * jax.nn.sigmoid(xf)
    o_ref[...] = y.astype(o_ref.dtype)


def _device_kind() -> str:
    try:
        return jax.devices()[0].device_kind.lower()
    except Exception:
        return ""


def _is_v5e(kind: str) -> bool:
    return ("v5 lite" in kind) or ("v5e" in kind) or ("v5litepod" in kind)


def _pick_block_rows(itemsize: int) -> int:
    """Per-buffer tile bytes tuned per TPU generation.

    Input + output are each double-buffered, so total VMEM ~= 4x tile bytes:
      v5e: 1 MiB tiles -> ~4 MiB  (16 MiB default scoped VMEM)
      v6e: 4 MiB tiles -> ~16 MiB (32 MiB default scoped VMEM)
      v7x: 4 MiB tiles -> ~16 MiB (32 MiB default, 64 MiB physical VMEM)
    """
    target_bytes = (1 << 20) if _is_v5e(_device_kind()) else (4 << 20)
    rows = target_bytes // (LANES * itemsize)
    return max(SUBLANES, (int(rows) // SUBLANES) * SUBLANES)


@functools.partial(jax.jit, static_argnames=("block_rows",))
def swish(x: jax.Array, *, block_rows=None) -> jax.Array:
    """Elementwise Swish/SiLU: x * sigmoid(x). Matches torch semantics."""
    orig_shape = x.shape
    orig_dtype = x.dtype
    n = x.size
    if n == 0:
        return x

    itemsize = jnp.dtype(orig_dtype).itemsize
    if block_rows is None:
        block_rows = _pick_block_rows(itemsize)

    # Minimal padding: only up to a multiple of (8 * 128) elements so the
    # (rows, 128) slab has sublane-aligned rows.  Skipped when already aligned
    # so the usual CNN-activation shapes see no extra HBM round trip.
    align = SUBLANES * LANES
    n_pad = pl.cdiv(n, align) * align
    x_flat = jnp.ravel(x)
    padded = n_pad != n
    if padded:
        x_flat = jnp.pad(x_flat, (0, n_pad - n))
    rows = n_pad // LANES
    x2d = x_flat.reshape(rows, LANES)

    block_rows = min(block_rows, rows)   # both are multiples of SUBLANES
    grid = (pl.cdiv(rows, block_rows),)  # partial last block masked by Pallas

    out2d = pl.pallas_call(
        _swish_kernel,
        out_shape=jax.ShapeDtypeStruct((rows, LANES), orig_dtype),
        grid_spec=pltpu.PrefetchScalarGridSpec(
            num_scalar_prefetch=0,
            grid=grid,
            in_specs=[pl.BlockSpec((block_rows, LANES), lambda i: (i, 0))],
            out_specs=pl.BlockSpec((block_rows, LANES), lambda i: (i, 0)),
        ),
        compiler_params=pltpu.CompilerParams(
            dimension_semantics=("parallel",),
        ),
        cost_estimate=pl.CostEstimate(
            flops=4 * n,
            transcendentals=n,
            bytes_accessed=2 * n * itemsize,
        ),
    )(x2d)

    out_flat = out2d.reshape(-1)
    if padded:
        out_flat = out_flat[:n]
    return out_flat.reshape(orig_shape)


if __name__ == "__main__":
    key = jax.random.PRNGKey(0)
    # Small NCDHW input consistent with a 3D-CNN activation: (N, C, D, H, W)
    x = jax.random.normal(key, (2, 4, 8, 16, 16), dtype=jnp.float32)

    # f32 path (exact).
    y = jax.block_until_ready(swish(x))
    y_ref = x * jax.nn.sigmoid(x)
    assert y.shape == x.shape and y.dtype == x.dtype
    assert jnp.allclose(y, y_ref, atol=1e-6, rtol=1e-6)

    # bf16 path (same kernel, f32 compute inside, cast back).
    xb = x.astype(jnp.bfloat16)
    yb = jax.block_until_ready(swish(xb))
    yb_ref = (xb.astype(jnp.float32) * jax.nn.sigmoid(xb.astype(jnp.float32))
              ).astype(jnp.bfloat16)
    assert yb.shape == xb.shape and yb.dtype == xb.dtype
    assert jnp.allclose(yb.astype(jnp.float32), yb_ref.astype(jnp.float32),
                        atol=2e-2, rtol=2e-2)

    # Non-aligned size to exercise the padded boundary-block path.
    xo = jax.random.normal(jax.random.PRNGKey(1), (3, 5, 7, 11), dtype=jnp.float32)
    yo = jax.block_until_ready(swish(xo))
    assert jnp.allclose(yo, xo * jax.nn.sigmoid(xo), atol=1e-6, rtol=1e-6)

    print("KERNEL_OK")
</pallas_src>

<mosaic_0001>
module attributes {stable_mosaic.version = 11 : i64} {
  func.func @_swish_kernel(%arg0: i32, %arg1: memref<128x128xf32, #tpu.memory_space<vmem>>, %arg2: memref<128x128xf32, #tpu.memory_space<vmem>>) attributes {dimension_semantics = [#tpu.dimension_semantics<parallel>], iteration_bounds = array<i64: 1>, scalar_prefetch = 0 : i64, scratch_operands = 0 : i64, tpu.core_type = #tpu.core_type<tc>, window_params = [{transform_indices = @transform_0, window_bounds = array<i64: 128, 128>}, {transform_indices = @transform_1, window_bounds = array<i64: 128, 128>}]} {
    %c0 = arith.constant 0 : index
    %c0_0 = arith.constant 0 : index
    %0 = vector.load %arg1[%c0, %c0_0] : memref<128x128xf32, #tpu.memory_space<vmem>>, vector<128x128xf32>
    %1 = arith.negf %0 : vector<128x128xf32>
    %2 = math.exp %1 : vector<128x128xf32>
    %cst = arith.constant 1.000000e+00 : f32
    %3 = vector.broadcast %cst : f32 to vector<128x128xf32>
    %4 = arith.addf %3, %2 : vector<128x128xf32>
    %5 = arith.divf %3, %4 : vector<128x128xf32>
    %6 = arith.mulf %0, %5 : vector<128x128xf32>
    %c0_1 = arith.constant 0 : index
    %c0_2 = arith.constant 0 : index
    %7 = vector.load %arg2[%c0_1, %c0_2] : memref<128x128xf32, #tpu.memory_space<vmem>>, vector<128x128xf32>
    tpu.vector_store %arg2[%c0_1, %c0_2], %6 {strides = array<i32>} : memref<128x128xf32, #tpu.memory_space<vmem>>, vector<128x128xf32>,
    return
  }
  func.func @transform_0(%arg0: i32) -> (i32, i32) {
    %c0_i32 = arith.constant 0 : i32
    %c0_i32_0 = arith.constant 0 : i32
    return %arg0, %c0_i32 : i32, i32
  }
  func.func @transform_1(%arg0: i32) -> (i32, i32) {
    %c0_i32 = arith.constant 0 : i32
    %c0_i32_0 = arith.constant 0 : i32
    return %arg0, %c0_i32 : i32, i32
  }
}

</mosaic_0001>

<bundles_post_ra>
// kernel: swish.1
= control target key start
LH: loop header
LB: loop body
LE: loop exit
PB: predicated region body
PF: predicated region fallthrough
CT: control target
= control target key end

     0   :  { %s406_s0 = inlined_call_operand.vmem [shape: f32[128,128], index: 0, kind: input, shape index: {}]   ;;  %s407_s1 = inlined_call_operand.vmem [shape: f32[128,128], index: 1, kind: output, shape index: {}]  }
   0x1   :  { %v249_v0 = vld [vmem:[%s406_s0] sm:$0xff]  ;;  %v254_v1 = vld [vmem:[%s406_s0 + $0x8] sm:$0xff]  ;;  %v259_v2 = vld [vmem:[%s406_s0 + $0x10] sm:$0xff] }
   0x2   :  { %v156_v3 = vmul.f32 -1.442695, %v249_v0  ;;  %v157_v4 = vmul.f32 -1.442695, %v254_v1  ;;  %v158_v5 = vmul.f32 -1.442695, %v259_v2 }
   0x3   :  { %v267_v6 = vld [vmem:[%s406_s0 + $0x18] sm:$0xff]  ;;  %v272_v7 = vld [vmem:[%s406_s0 + $0x20] sm:$0xff]  ;;  %v277_v8 = vld [vmem:[%s406_s0 + $0x28] sm:$0xff] }
   0x4   :  { %172 = vpow2.f32 %v156_v3  ;;  %v159_v9 = vmul.f32 -1.442695, %v267_v6  ;;  %v160_v10 = vmul.f32 -1.442695, %v272_v7  ;;  %v161_v11 = vmul.f32 -1.442695, %v277_v8 }
   0x5   :  { %174 = vpow2.f32 %v157_v4  ;;  %v285_v12 = vld [vmem:[%s406_s0 + $0x30] sm:$0xff]  ;;  %v290_v13 = vld [vmem:[%s406_s0 + $0x38] sm:$0xff]  ;;  %v295_v14 = vld [vmem:[%s406_s0 + $0x40] sm:$0xff] }
   0x6   :  { %176 = vpow2.f32 %v158_v5  ;;  %v162_v15 = vmul.f32 -1.442695, %v285_v12  ;;  %v163_v16 = vmul.f32 -1.442695, %v290_v13  ;;  %v302_v17 = vld [vmem:[%s406_s0 + $0x48] sm:$0xff]  ;;  %v307_v18 = vld [vmem:[%s406_s0 + $0x50] sm:$0xff] }
   0x7   :  { %178 = vpow2.f32 %v159_v9  ;;  %v164_v19 = vmul.f32 -1.442695, %v295_v14  ;;  %v313_v20 = vld [vmem:[%s406_s0 + $0x58] sm:$0xff]  ;;  %v165_v21 = vmul.f32 -1.442695, %v302_v17  ;;  %v319_v22 = vld [vmem:[%s406_s0 + $0x60] sm:$0xff] }
   0x8   :  { %180 = vpow2.f32 %v160_v10  ;;  %v166_v23 = vmul.f32 -1.442695, %v307_v18  ;;  %v167_v24 = vmul.f32 -1.442695, %v313_v20  ;;  %v168_v25 = vmul.f32 -1.442695, %v319_v22 }
   0x9   :  { %182 = vpow2.f32 %v161_v11  ;;  %v327_v45 = vld [vmem:[%s406_s0 + $0x68] sm:$0xff]  ;;  %v332_v48 = vld [vmem:[%s406_s0 + $0x70] sm:$0xff]  ;;  %v337_v51 = vld [vmem:[%s406_s0 + $0x78] sm:$0xff] }
   0xa   :  { %184 = vpow2.f32 %v162_v15  ;;  %v169_v54 = vmul.f32 -1.442695, %v327_v45  ;;  %v170_v57 = vmul.f32 -1.442695, %v332_v48  ;;  %v171_v60 = vmul.f32 -1.442695, %v337_v51 }
   0xb   :  { %186 = vpow2.f32 %v163_v16 }
   0xc   :  { %188 = vpow2.f32 %v164_v19 }
   0xd   :  { %190 = vpow2.f32 %v165_v21 }
   0xe   :  { %v173_v26 = vpop.eup %172  ;;  %192 = vpow2.f32 %v166_v23 }
   0xf   :  { %v175_v27 = vpop.eup %174  ;;  %v72_v28 = vadd.f32 1.0, %v173_v26  ;;  %194 = vpow2.f32 %v167_v24 }
  0x10   :  { %v177_v29 = vpop.eup %176  ;;  %v73_v30 = vadd.f32 1.0, %v175_v27  ;;  %196 = vpow2.f32 %v168_v25 }
  0x11   :  { %v179_v31 = vpop.eup %178  ;;  %198 = vrcp.f32 %v72_v28  ;;  %v74_v32 = vadd.f32 1.0, %v177_v29 }
  0x12   :  { %v181_v33 = vpop.eup %180  ;;  %200 = vrcp.f32 %v73_v30  ;;  %v75_v34 = vadd.f32 1.0, %v179_v31 }
  0x13   :  { %v183_v35 = vpop.eup %182  ;;  %202 = vrcp.f32 %v74_v32  ;;  %v76_v36 = vadd.f32 1.0, %v181_v33 }
  0x14   :  { %v185_v37 = vpop.eup %184  ;;  %204 = vrcp.f32 %v75_v34  ;;  %v77_v38 = vadd.f32 1.0, %v183_v35 }
  0x15   :  { %v187_v39 = vpop.eup %186  ;;  %206 = vrcp.f32 %v76_v36  ;;  %v78_v40 = vadd.f32 1.0, %v185_v37 }
  0x16   :  { %v189_v41 = vpop.eup %188  ;;  %208 = vrcp.f32 %v77_v38  ;;  %v79_v42 = vadd.f32 1.0, %v187_v39 }
  0x17   :  { %v191_v43 = vpop.eup %190  ;;  %210 = vrcp.f32 %v78_v40  ;;  %v80_v44 = vadd.f32 1.0, %v189_v41 }
  0x18   :  { %v193_v46 = vpop.eup %192  ;;  %212 = vrcp.f32 %v79_v42  ;;  %v81_v47 = vadd.f32 1.0, %v191_v43 }
  0x19   :  { %v195_v49 = vpop.eup %194  ;;  %214 = vrcp.f32 %v80_v44  ;;  %v82_v50 = vadd.f32 1.0, %v193_v46 }
  0x1a   :  { %v197_v52 = vpop.eup %196  ;;  %216 = vrcp.f32 %v81_v47  ;;  %v83_v53 = vadd.f32 1.0, %v195_v49 }
  0x1b   :  { %v199_v55 = vpop.eup %198  ;;  %218 = vrcp.f32 %v82_v50  ;;  %v84_v56 = vadd.f32 1.0, %v197_v52 }
  0x1c   :  { %v201_v58 = vpop.eup %200  ;;  %v120_v59 = vmul.f32 %v199_v55, %v249_v0  ;;  %220 = vrcp.f32 %v83_v53 }
  0x1d   :  { %v203_v61 = vpop.eup %202  ;;  %v121_v62 = vmul.f32 %v201_v58, %v254_v1  ;;  %222 = vrcp.f32 %v84_v56 }
  0x1e   :  { %v205_v63 = vpop.eup %204  ;;  %136 = vst [vmem:[%s407_s1] sm:$0xff] %v120_v59  ;;  %v122_v3 = vmul.f32 %v203_v61, %v259_v2  ;;  %224 = vpow2.f32 %v169_v54 }
  0x1f   :  { %v207_v4 = vpop.eup %206  ;;  %137 = vst [vmem:[%s407_s1 + $0x8] sm:$0xff] %v121_v62  ;;  %v123_v0 = vmul.f32 %v205_v63, %v267_v6  ;;  %226 = vpow2.f32 %v170_v57 }
  0x20   :  { %v209_v5 = vpop.eup %208  ;;  %138 = vst [vmem:[%s407_s1 + $0x10] sm:$0xff] %v122_v3  ;;  %v124_v1 = vmul.f32 %v207_v4, %v272_v7  ;;  %228 = vpow2.f32 %v171_v60 }
  0x21   :  { %v211_v9 = vpop.eup %210  ;;  %139 = vst [vmem:[%s407_s1 + $0x18] sm:$0xff] %v123_v0  ;;  %v125_v2 = vmul.f32 %v209_v5, %v277_v8 }
  0x22   :  { %v213_v10 = vpop.eup %212  ;;  %140 = vst [vmem:[%s407_s1 + $0x20] sm:$0xff] %v124_v1  ;;  %v126_v6 = vmul.f32 %v211_v9, %v285_v12 }
  0x23   :  { %v215_v11 = vpop.eup %214  ;;  %141 = vst [vmem:[%s407_s1 + $0x28] sm:$0xff] %v125_v2  ;;  %v127_v7 = vmul.f32 %v213_v10, %v290_v13 }
  0x24   :  { %v217_v15 = vpop.eup %216  ;;  %142 = vst [vmem:[%s407_s1 + $0x30] sm:$0xff] %v126_v6  ;;  %v128_v8 = vmul.f32 %v215_v11, %v295_v14 }
  0x25   :  { %v219_v16 = vpop.eup %218  ;;  %143 = vst [vmem:[%s407_s1 + $0x38] sm:$0xff] %v127_v7  ;;  %v129_v12 = vmul.f32 %v217_v15, %v302_v17 }
  0x26   :  { %v221_v19 = vpop.eup %220  ;;  %144 = vst [vmem:[%s407_s1 + $0x40] sm:$0xff] %v128_v8  ;;  %v130_v13 = vmul.f32 %v219_v16, %v307_v18 }
  0x27   :  { %v223_v21 = vpop.eup %222  ;;  %145 = vst [vmem:[%s407_s1 + $0x48] sm:$0xff] %v129_v12  ;;  %v131_v14 = vmul.f32 %v221_v19, %v313_v20 }
  0x28   :  { %v225_v23 = vpop.eup %224  ;;  %146 = vst [vmem:[%s407_s1 + $0x50] sm:$0xff] %v130_v13  ;;  %v132_v17 = vmul.f32 %v223_v21, %v319_v22 }
  0x29   :  { %v227_v24 = vpop.eup %226  ;;  %147 = vst [vmem:[%s407_s1 + $0x58] sm:$0xff] %v131_v14  ;;  %v85_v18 = vadd.f32 1.0, %v225_v23 }
  0x2a   :  { %v229_v25 = vpop.eup %228  ;;  %148 = vst [vmem:[%s407_s1 + $0x60] sm:$0xff] %v132_v17  ;;  %v86_v26 = vadd.f32 1.0, %v227_v24 }
  0x2b   :  { %230 = vrcp.f32 %v85_v18  ;;  %v87_v20 = vadd.f32 1.0, %v229_v25 }
  0x2c   :  { %232 = vrcp.f32 %v86_v26 }
  0x2d   :  { %234 = vrcp.f32 %v87_v20 }
  0x35   :  { %v231_v27 = vpop.eup %230 }
  0x36   :  { %v233_v28 = vpop.eup %232  ;;  %v133_v22 = vmul.f32 %v231_v27, %v327_v45 }
  0x37   :  { %v235_v29 = vpop.eup %234  ;;  %v134_v30 = vmul.f32 %v233_v28, %v332_v48 }
  0x38   :  { %149 = vst [vmem:[%s407_s1 + $0x68] sm:$0xff] %v133_v22  ;;  %v135_v31 = vmul.f32 %v235_v29, %v337_v51 }
  0x39   :  { %150 = vst [vmem:[%s407_s1 + $0x70] sm:$0xff] %v134_v30 }
  0x3a   :  { %151 = vst [vmem:[%s407_s1 + $0x78] sm:$0xff] %v135_v31 }

</bundles_post_ra>
